<compile_context>
chip_gen: v7x
topology: tpu7x:2x2x1
jax: 0.10.0
libtpu: 0.0.40
codegen_flags: <defaults>
</compile_context>

<pallas_src>
import functools

import jax
import jax.numpy as jnp
from jax.experimental import pallas as pl
from jax.experimental.pallas import tpu as pltpu


def _interp_matrix(in_size: int, out_size: int) -> jnp.ndarray:
    """Full 1-D interpolation matrix matching PyTorch bilinear, align_corners=False."""
    scale = in_size / out_size
    j = jnp.arange(out_size, dtype=jnp.float32)
    src = jnp.maximum((j + 0.5) * scale - 0.5, 0.0)      # PyTorch clamps negative src
    i0 = jnp.minimum(jnp.floor(src).astype(jnp.int32), in_size - 1)
    i1 = jnp.minimum(i0 + 1, in_size - 1)
    lam = src - i0.astype(jnp.float32)
    rows = jnp.arange(out_size)
    w = jnp.zeros((out_size, in_size), jnp.float32)
    w = w.at[rows, i0].add(1.0 - lam)
    w = w.at[rows, i1].add(lam)
    return w


def _wy_band(thi: int) -> jnp.ndarray:
    """Banded row-interp matrix for one tile of THI input rows (scale factor 2).

    out[2m]   = 0.25*x[m-1] + 0.75*x[m]   (the m==0     halo term added in-kernel)
    out[2m+1] = 0.75*x[m]   + 0.25*x[m+1] (the m==THI-1 halo term added in-kernel)
    """
    m = jnp.arange(thi)
    w = jnp.zeros((2 * thi, thi), jnp.float32)
    w = w.at[2 * m, m].add(0.75)
    w = w.at[2 * m[1:], m[1:] - 1].add(0.25)
    w = w.at[2 * m + 1, m].add(0.75)
    w = w.at[2 * m[:-1] + 1, m[:-1] + 1].add(0.25)
    return w


def _choose_row_tile(h: int) -> int:
    """Input-row tile: <= 256 (MXU contraction width), multiple of 8, divides H."""
    if h <= 256:
        return h
    for t in range(256, 7, -8):
        if h % t == 0:
            return t
    # TODO(synk): H with no multiple-of-8 divisor <= 256 falls back to a single
    # full-height band (correct, but large VMEM blocks for huge prime-ish H).
    return h


def _choose_batch_tile(b: int, thi: int, w: int, itemsize: int) -> int:
    """Images per grid step: ~0.5 MiB of input per step, >= 2 batch steps if possible."""
    target_in_bytes = 512 * 1024
    tb = max(1, min(8, target_in_bytes // max(1, thi * w * itemsize)))
    tb = min(tb, b)
    if b >= 2:                      # keep both v7x TensorCores busy
        tb = min(tb, -(-b // 2))
    return int(tb)


def _vmem_limit_bytes() -> int:
    try:
        cap = int(pltpu.get_tpu_info().vmem_capacity_bytes)
    except Exception:
        cap = 64 * 1024 * 1024
    return min(cap * 3 // 4, 96 * 1024 * 1024)


def _upsample_kernel(x_ref, prev_ref, next_ref, wy_ref, wxt_ref, o_ref, *,
                     tb, thi, hb, compute_dtype):
    # x_ref:    (TB, THI, W)   main input-row band of TB images
    # prev_ref: (TB, HB,  W)   halo block just below the band (last row used)
    # next_ref: (TB, HB,  W)   halo block just above the band (first row used)
    # wy_ref:   (2*THI, THI)   banded row-interp matrix (constant)
    # wxt_ref:  (W, 2W)        width-interp matrix (constant)
    # o_ref:    (TB, 2*THI, 2W) output rows in final layout
    r = pl.program_id(1)
    nr = pl.num_programs(1)
    tho = 2 * thi

    wy = wy_ref[...]
    wxt = wxt_ref[...]

    row = jax.lax.broadcasted_iota(jnp.int32, (tho, 1), 0)
    first_mask = (row == 0).astype(jnp.float32)
    last_mask = (row == tho - 1).astype(jnp.float32)

    for b in range(tb):
        xb = x_ref[b]                                              # (THI, W)
        # Halo rows; clamp to the edge row at the image boundary (align_corners=False).
        prev_row = jnp.where(r > 0, prev_ref[b, hb - 1:hb, :], xb[0:1, :])
        next_row = jnp.where(r < nr - 1, next_ref[b, 0:1, :], xb[thi - 1:thi, :])

        # Row (height) pass on the MXU + rank-1 halo fix-ups on the VPU.
        t = jnp.dot(wy, xb, preferred_element_type=jnp.float32)    # (2*THI, W) f32
        t = t + first_mask * (0.25 * prev_row.astype(jnp.float32))
        t = t + last_mask * (0.25 * next_row.astype(jnp.float32))

        # Width pass on the MXU (per image, contraction = W; no kron blow-up).
        y = jnp.dot(t.astype(compute_dtype), wxt,
                    preferred_element_type=jnp.float32)            # (2*THI, 2W)
        o_ref[b] = y.astype(o_ref.dtype)


def upsample_bilinear_2x(x: jnp.ndarray) -> jnp.ndarray:
    """x: (N, C, H, W) -> (N, C, 2H, 2W), bilinear, align_corners=False."""
    N, C, H, W = x.shape
    Ho, Wo = 2 * H, 2 * W
    B = N * C

    # Native bf16 MXU path for bf16 inputs (weights are multiples of 0.25 -> exact).
    compute_dtype = jnp.bfloat16 if x.dtype == jnp.bfloat16 else jnp.float32

    THI = _choose_row_tile(H)
    R = H // THI
    HB = 8 if H >= 8 else H               # halo block height
    S = max(THI // HB, 1)                 # main band height in halo blocks
    n_hb = pl.cdiv(H, HB)                 # number of halo blocks along H
    TB = _choose_batch_tile(B, THI, W, jnp.dtype(x.dtype).itemsize)
    G = pl.cdiv(B, TB)

    wy = _wy_band(THI).astype(compute_dtype)              # (2*THI, THI)
    wxt = _interp_matrix(W, Wo).T.astype(compute_dtype)   # (W, Wo)

    x3 = x.reshape(B, H, W)               # free reshape, no transpose / extra HBM traffic

    kernel = functools.partial(_upsample_kernel, tb=TB, thi=THI, hb=HB,
                               compute_dtype=compute_dtype)

    out3 = pl.pallas_call(
        kernel,
        out_shape=jax.ShapeDtypeStruct((B, Ho, Wo), x.dtype),
        grid_spec=pltpu.PrefetchScalarGridSpec(
            num_scalar_prefetch=0,
            grid=(G, R),
            in_specs=[
                # main row band of TB images
                pl.BlockSpec((TB, THI, W), lambda g, r: (g, r, 0)),
                # halo blocks just below / above the band (one row of each is used)
                pl.BlockSpec((TB, HB, W),
                             lambda g, r: (g, jnp.maximum(r * S - 1, 0), 0)),
                pl.BlockSpec((TB, HB, W),
                             lambda g, r: (g, jnp.minimum((r + 1) * S, n_hb - 1), 0)),
                # constant interpolation matrices
                pl.BlockSpec((2 * THI, THI), lambda g, r: (0, 0)),
                pl.BlockSpec((W, Wo), lambda g, r: (0, 0)),
            ],
            out_specs=pl.BlockSpec((TB, 2 * THI, Wo), lambda g, r: (g, r, 0)),
        ),
        compiler_params=pltpu.CompilerParams(
            dimension_semantics=("parallel", "parallel"),
            vmem_limit_bytes=_vmem_limit_bytes(),
        ),
    )(x3, x3, x3, wy, wxt)

    return out3.reshape(N, C, Ho, Wo)


def _reference(x: jnp.ndarray) -> jnp.ndarray:
    """Pure-JAX reference (fp32) using the full interpolation matrices."""
    N, C, H, W = x.shape
    wy = _interp_matrix(H, 2 * H)
    wx = _interp_matrix(W, 2 * W)
    return jnp.einsum("oh,nchw,pw->ncop", wy, x.astype(jnp.float32), wx)


if __name__ == "__main__":
    # 1) Small shape matching the module's typical use.
    x = jax.random.normal(jax.random.PRNGKey(0), (2, 4, 16, 16), dtype=jnp.float32)
    out = jax.block_until_ready(upsample_bilinear_2x(x))
    assert out.shape == (2, 4, 32, 32), out.shape
    ref = _reference(x)
    assert jnp.allclose(out.astype(jnp.float32), ref, atol=1e-5, rtol=1e-5), \
        float(jnp.max(jnp.abs(out.astype(jnp.float32) - ref)))

    # 2) Batch not a multiple of the batch tile (exercises partial batch blocks).
    x2 = jax.random.normal(jax.random.PRNGKey(1), (1, 3, 8, 8), dtype=jnp.float32)
    out2 = jax.block_until_ready(upsample_bilinear_2x(x2))
    assert out2.shape == (1, 3, 16, 16), out2.shape
    assert jnp.allclose(out2.astype(jnp.float32), _reference(x2), atol=1e-5, rtol=1e-5)

    # 3) Tall image -> banded row pass with interior tiles that use both halos.
    x3 = jax.random.normal(jax.random.PRNGKey(2), (1, 2, 768, 8), dtype=jnp.float32)
    out3 = jax.block_until_ready(upsample_bilinear_2x(x3))
    assert out3.shape == (1, 2, 1536, 16), out3.shape
    assert jnp.allclose(out3.astype(jnp.float32), _reference(x3), atol=1e-5, rtol=1e-5)

    # 4) bf16 smoke test (intermediate bf16 rounding -> loose tolerance, documented).
    xb = x.astype(jnp.bfloat16)
    outb = jax.block_until_ready(upsample_bilinear_2x(xb))
    assert outb.dtype == jnp.bfloat16 and outb.shape == (2, 4, 32, 32)
    assert jnp.allclose(outb.astype(jnp.float32), _reference(xb), atol=5e-2, rtol=5e-2)

    print("KERNEL_OK")
</pallas_src>

<mosaic_0001>
module attributes {stable_mosaic.version = 11 : i64} {
  func.func @_upsample_kernel(%arg0: i32, %arg1: i32, %arg2: memref<4x16x16xf32, #tpu.memory_space<vmem>>, %arg3: memref<4x8x16xf32, #tpu.memory_space<vmem>>, %arg4: memref<4x8x16xf32, #tpu.memory_space<vmem>>, %arg5: memref<32x16xf32, #tpu.memory_space<vmem>>, %arg6: memref<16x32xf32, #tpu.memory_space<vmem>>, %arg7: memref<4x32x32xf32, #tpu.memory_space<vmem>>) attributes {dimension_semantics = [#tpu.dimension_semantics<parallel>, #tpu.dimension_semantics<parallel>], iteration_bounds = array<i64: 2, 1>, scalar_prefetch = 0 : i64, scratch_operands = 0 : i64, tpu.core_type = #tpu.core_type<tc>, window_params = [{transform_indices = @transform_0, window_bounds = array<i64: 4, 16, 16>}, {transform_indices = @transform_1, window_bounds = array<i64: 4, 8, 16>}, {transform_indices = @transform_2, window_bounds = array<i64: 4, 8, 16>}, {pipeline_mode = #tpu.pipeline_mode<synchronous>, transform_indices = @transform_3, window_bounds = array<i64: 32, 16>}, {pipeline_mode = #tpu.pipeline_mode<synchronous>, transform_indices = @transform_4, window_bounds = array<i64: 16, 32>}, {transform_indices = @transform_5, window_bounds = array<i64: 4, 32, 32>}]} {
    %c0 = arith.constant 0 : index
    %c0_0 = arith.constant 0 : index
    %0 = vector.load %arg5[%c0, %c0_0] : memref<32x16xf32, #tpu.memory_space<vmem>>, vector<32x16xf32>
    %c0_1 = arith.constant 0 : index
    %c0_2 = arith.constant 0 : index
    %1 = vector.load %arg6[%c0_1, %c0_2] : memref<16x32xf32, #tpu.memory_space<vmem>>, vector<16x32xf32>
    %2 = tpu.iota {dimensions = array<i32: 0>} : vector<32x1xi32>
    %c0_i32 = arith.constant 0 : i32
    %3 = vector.broadcast %c0_i32 : i32 to vector<32x1xi32>
    %4 = arith.cmpi eq, %2, %3 : vector<32x1xi32>
    %5 = arith.extui %4 : vector<32x1xi1> to vector<32x1xi32>
    %6 = arith.sitofp %5 : vector<32x1xi32> to vector<32x1xf32>
    %c31_i32 = arith.constant 31 : i32
    %7 = vector.broadcast %c31_i32 : i32 to vector<32x1xi32>
    %8 = arith.cmpi eq, %2, %7 : vector<32x1xi32>
    %9 = arith.extui %8 : vector<32x1xi1> to vector<32x1xi32>
    %10 = arith.sitofp %9 : vector<32x1xi32> to vector<32x1xf32>
    %c0_3 = arith.constant 0 : index
    %c0_4 = arith.constant 0 : index
    %c0_5 = arith.constant 0 : index
    %11 = vector.load %arg2[%c0_3, %c0_4, %c0_5] : memref<4x16x16xf32, #tpu.memory_space<vmem>>, vector<1x16x16xf32>
    %12 = vector.shape_cast %11 : vector<1x16x16xf32> to vector<16x16xf32>
    %c0_i32_6 = arith.constant 0 : i32
    %13 = arith.cmpi sgt, %arg1, %c0_i32_6 : i32
    %c0_7 = arith.constant 0 : index
    %c7 = arith.constant 7 : index
    %c0_8 = arith.constant 0 : index
    %14 = vector.load %arg3[%c0_7, %c7, %c0_8] : memref<4x8x16xf32, #tpu.memory_space<vmem>>, vector<1x1x16xf32>
    %15 = vector.shape_cast %14 : vector<1x1x16xf32> to vector<1x16xf32>
    %16 = vector.extract_strided_slice %12 {offsets = [0, 0], sizes = [1, 16], strides = [1, 1]} : vector<16x16xf32> to vector<1x16xf32>
    %17 = arith.select %13, %15, %16 : vector<1x16xf32>
    %c0_i32_9 = arith.constant 0 : i32
    %18 = arith.cmpi slt, %arg1, %c0_i32_9 : i32
    %c0_10 = arith.constant 0 : index
    %c0_11 = arith.constant 0 : index
    %c0_12 = arith.constant 0 : index
    %19 = vector.load %arg4[%c0_10, %c0_11, %c0_12] : memref<4x8x16xf32, #tpu.memory_space<vmem>>, vector<1x1x16xf32>
    %20 = vector.shape_cast %19 : vector<1x1x16xf32> to vector<1x16xf32>
    %21 = vector.extract_strided_slice %12 {offsets = [15, 0], sizes = [1, 16], strides = [1, 1]} : vector<16x16xf32> to vector<1x16xf32>
    %22 = arith.select %18, %20, %21 : vector<1x16xf32>
    %cst = arith.constant dense<0.000000e+00> : vector<32x16xf32>
    %23 = tpu.matmul %0, %12, %cst {dimension_numbers = #tpu.dot_dimension_numbers<[1], [0], [0], [1], [0, 0, 1, 1], [], []>} : vector<32x16xf32>, vector<16x16xf32>, vector<32x16xf32> -> vector<32x16xf32>
    %cst_13 = arith.constant 2.500000e-01 : f32
    %24 = vector.broadcast %cst_13 : f32 to vector<1x16xf32>
    %25 = arith.mulf %24, %17 : vector<1x16xf32>
    %26 = vector.broadcast %6 : vector<32x1xf32> to vector<32x16xf32>
    %27 = vector.broadcast %25 : vector<1x16xf32> to vector<32x16xf32>
    %28 = arith.mulf %26, %27 : vector<32x16xf32>
    %29 = arith.addf %23, %28 : vector<32x16xf32>
    %cst_14 = arith.constant 2.500000e-01 : f32
    %30 = vector.broadcast %cst_14 : f32 to vector<1x16xf32>
    %31 = arith.mulf %30, %22 : vector<1x16xf32>
    %32 = vector.broadcast %10 : vector<32x1xf32> to vector<32x16xf32>
    %33 = vector.broadcast %31 : vector<1x16xf32> to vector<32x16xf32>
    %34 = arith.mulf %32, %33 : vector<32x16xf32>
    %35 = arith.addf %29, %34 : vector<32x16xf32>
    %cst_15 = arith.constant dense<0.000000e+00> : vector<32x32xf32>
    %36 = tpu.matmul %35, %1, %cst_15 {dimension_numbers = #tpu.dot_dimension_numbers<[1], [0], [0], [1], [0, 0, 1, 1], [], []>} : vector<32x16xf32>, vector<16x32xf32>, vector<32x32xf32> -> vector<32x32xf32>
    %c0_16 = arith.constant 0 : index
    %c0_17 = arith.constant 0 : index
    %c0_18 = arith.constant 0 : index
    %37 = vector.load %arg7[%c0_16, %c0_17, %c0_18] : memref<4x32x32xf32, #tpu.memory_space<vmem>>, vector<1x32x32xf32>
    %38 = vector.shape_cast %37 : vector<1x32x32xf32> to vector<32x32xf32>
    %39 = vector.shape_cast %36 : vector<32x32xf32> to vector<1x32x32xf32>
    tpu.vector_store %arg7[%c0_16, %c0_17, %c0_18], %39 {strides = array<i32>} : memref<4x32x32xf32, #tpu.memory_space<vmem>>, vector<1x32x32xf32>,
    %c1 = arith.constant 1 : index
    %c0_19 = arith.constant 0 : index
    %c0_20 = arith.constant 0 : index
    %40 = vector.load %arg2[%c1, %c0_19, %c0_20] : memref<4x16x16xf32, #tpu.memory_space<vmem>>, vector<1x16x16xf32>
    %41 = vector.shape_cast %40 : vector<1x16x16xf32> to vector<16x16xf32>
    %c0_i32_21 = arith.constant 0 : i32
    %42 = arith.cmpi sgt, %arg1, %c0_i32_21 : i32
    %c1_22 = arith.constant 1 : index
    %c7_23 = arith.constant 7 : index
    %c0_24 = arith.constant 0 : index
    %43 = vector.load %arg3[%c1_22, %c7_23, %c0_24] : memref<4x8x16xf32, #tpu.memory_space<vmem>>, vector<1x1x16xf32>
    %44 = vector.shape_cast %43 : vector<1x1x16xf32> to vector<1x16xf32>
    %45 = vector.extract_strided_slice %41 {offsets = [0, 0], sizes = [1, 16], strides = [1, 1]} : vector<16x16xf32> to vector<1x16xf32>
    %46 = arith.select %42, %44, %45 : vector<1x16xf32>
    %c0_i32_25 = arith.constant 0 : i32
    %47 = arith.cmpi slt, %arg1, %c0_i32_25 : i32
    %c1_26 = arith.constant 1 : index
    %c0_27 = arith.constant 0 : index
    %c0_28 = arith.constant 0 : index
    %48 = vector.load %arg4[%c1_26, %c0_27, %c0_28] : memref<4x8x16xf32, #tpu.memory_space<vmem>>, vector<1x1x16xf32>
    %49 = vector.shape_cast %48 : vector<1x1x16xf32> to vector<1x16xf32>
    %50 = vector.extract_strided_slice %41 {offsets = [15, 0], sizes = [1, 16], strides = [1, 1]} : vector<16x16xf32> to vector<1x16xf32>
    %51 = arith.select %47, %49, %50 : vector<1x16xf32>
    %cst_29 = arith.constant dense<0.000000e+00> : vector<32x16xf32>
    %52 = tpu.matmul %0, %41, %cst_29 {dimension_numbers = #tpu.dot_dimension_numbers<[1], [0], [0], [1], [0, 0, 1, 1], [], []>} : vector<32x16xf32>, vector<16x16xf32>, vector<32x16xf32> -> vector<32x16xf32>
    %cst_30 = arith.constant 2.500000e-01 : f32
    %53 = vector.broadcast %cst_30 : f32 to vector<1x16xf32>
    %54 = arith.mulf %53, %46 : vector<1x16xf32>
    %55 = vector.broadcast %6 : vector<32x1xf32> to vector<32x16xf32>
    %56 = vector.broadcast %54 : vector<1x16xf32> to vector<32x16xf32>
    %57 = arith.mulf %55, %56 : vector<32x16xf32>
    %58 = arith.addf %52, %57 : vector<32x16xf32>
    %cst_31 = arith.constant 2.500000e-01 : f32
    %59 = vector.broadcast %cst_31 : f32 to vector<1x16xf32>
    %60 = arith.mulf %59, %51 : vector<1x16xf32>
    %61 = vector.broadcast %10 : vector<32x1xf32> to vector<32x16xf32>
    %62 = vector.broadcast %60 : vector<1x16xf32> to vector<32x16xf32>
    %63 = arith.mulf %61, %62 : vector<32x16xf32>
    %64 = arith.addf %58, %63 : vector<32x16xf32>
    %cst_32 = arith.constant dense<0.000000e+00> : vector<32x32xf32>
    %65 = tpu.matmul %64, %1, %cst_32 {dimension_numbers = #tpu.dot_dimension_numbers<[1], [0], [0], [1], [0, 0, 1, 1], [], []>} : vector<32x16xf32>, vector<16x32xf32>, vector<32x32xf32> -> vector<32x32xf32>
    %c1_33 = arith.constant 1 : index
    %c0_34 = arith.constant 0 : index
    %c0_35 = arith.constant 0 : index
    %66 = vector.load %arg7[%c1_33, %c0_34, %c0_35] : memref<4x32x32xf32, #tpu.memory_space<vmem>>, vector<1x32x32xf32>
    %67 = vector.shape_cast %66 : vector<1x32x32xf32> to vector<32x32xf32>
    %68 = vector.shape_cast %65 : vector<32x32xf32> to vector<1x32x32xf32>
    tpu.vector_store %arg7[%c1_33, %c0_34, %c0_35], %68 {strides = array<i32>} : memref<4x32x32xf32, #tpu.memory_space<vmem>>, vector<1x32x32xf32>,
    %c2 = arith.constant 2 : index
    %c0_36 = arith.constant 0 : index
    %c0_37 = arith.constant 0 : index
    %69 = vector.load %arg2[%c2, %c0_36, %c0_37] : memref<4x16x16xf32, #tpu.memory_space<vmem>>, vector<1x16x16xf32>
    %70 = vector.shape_cast %69 : vector<1x16x16xf32> to vector<16x16xf32>
    %c0_i32_38 = arith.constant 0 : i32
    %71 = arith.cmpi sgt, %arg1, %c0_i32_38 : i32
    %c2_39 = arith.constant 2 : index
    %c7_40 = arith.constant 7 : index
    %c0_41 = arith.constant 0 : index
    %72 = vector.load %arg3[%c2_39, %c7_40, %c0_41] : memref<4x8x16xf32, #tpu.memory_space<vmem>>, vector<1x1x16xf32>
    %73 = vector.shape_cast %72 : vector<1x1x16xf32> to vector<1x16xf32>
    %74 = vector.extract_strided_slice %70 {offsets = [0, 0], sizes = [1, 16], strides = [1, 1]} : vector<16x16xf32> to vector<1x16xf32>
    %75 = arith.select %71, %73, %74 : vector<1x16xf32>
    %c0_i32_42 = arith.constant 0 : i32
    %76 = arith.cmpi slt, %arg1, %c0_i32_42 : i32
    %c2_43 = arith.constant 2 : index
    %c0_44 = arith.constant 0 : index
    %c0_45 = arith.constant 0 : index
    %77 = vector.load %arg4[%c2_43, %c0_44, %c0_45] : memref<4x8x16xf32, #tpu.memory_space<vmem>>, vector<1x1x16xf32>
    %78 = vector.shape_cast %77 : vector<1x1x16xf32> to vector<1x16xf32>
    %79 = vector.extract_strided_slice %70 {offsets = [15, 0], sizes = [1, 16], strides = [1, 1]} : vector<16x16xf32> to vector<1x16xf32>
    %80 = arith.select %76, %78, %79 : vector<1x16xf32>
    %cst_46 = arith.constant dense<0.000000e+00> : vector<32x16xf32>
    %81 = tpu.matmul %0, %70, %cst_46 {dimension_numbers = #tpu.dot_dimension_numbers<[1], [0], [0], [1], [0, 0, 1, 1], [], []>} : vector<32x16xf32>, vector<16x16xf32>, vector<32x16xf32> -> vector<32x16xf32>
    %cst_47 = arith.constant 2.500000e-01 : f32
    %82 = vector.broadcast %cst_47 : f32 to vector<1x16xf32>
    %83 = arith.mulf %82, %75 : vector<1x16xf32>
    %84 = vector.broadcast %6 : vector<32x1xf32> to vector<32x16xf32>
    %85 = vector.broadcast %83 : vector<1x16xf32> to vector<32x16xf32>
    %86 = arith.mulf %84, %85 : vector<32x16xf32>
    %87 = arith.addf %81, %86 : vector<32x16xf32>
    %cst_48 = arith.constant 2.500000e-01 : f32
    %88 = vector.broadcast %cst_48 : f32 to vector<1x16xf32>
    %89 = arith.mulf %88, %80 : vector<1x16xf32>
    %90 = vector.broadcast %10 : vector<32x1xf32> to vector<32x16xf32>
    %91 = vector.broadcast %89 : vector<1x16xf32> to vector<32x16xf32>
    %92 = arith.mulf %90, %91 : vector<32x16xf32>
    %93 = arith.addf %87, %92 : vector<32x16xf32>
    %cst_49 = arith.constant dense<0.000000e+00> : vector<32x32xf32>
    %94 = tpu.matmul %93, %1, %cst_49 {dimension_numbers = #tpu.dot_dimension_numbers<[1], [0], [0], [1], [0, 0, 1, 1], [], []>} : vector<32x16xf32>, vector<16x32xf32>, vector<32x32xf32> -> vector<32x32xf32>
    %c2_50 = arith.constant 2 : index
    %c0_51 = arith.constant 0 : index
    %c0_52 = arith.constant 0 : index
    %95 = vector.load %arg7[%c2_50, %c0_51, %c0_52] : memref<4x32x32xf32, #tpu.memory_space<vmem>>, vector<1x32x32xf32>
    %96 = vector.shape_cast %95 : vector<1x32x32xf32> to vector<32x32xf32>
    %97 = vector.shape_cast %94 : vector<32x32xf32> to vector<1x32x32xf32>
    tpu.vector_store %arg7[%c2_50, %c0_51, %c0_52], %97 {strides = array<i32>} : memref<4x32x32xf32, #tpu.memory_space<vmem>>, vector<1x32x32xf32>,
    %c3 = arith.constant 3 : index
    %c0_53 = arith.constant 0 : index
    %c0_54 = arith.constant 0 : index
    %98 = vector.load %arg2[%c3, %c0_53, %c0_54] : memref<4x16x16xf32, #tpu.memory_space<vmem>>, vector<1x16x16xf32>
    %99 = vector.shape_cast %98 : vector<1x16x16xf32> to vector<16x16xf32>
    %c0_i32_55 = arith.constant 0 : i32
    %100 = arith.cmpi sgt, %arg1, %c0_i32_55 : i32
    %c3_56 = arith.constant 3 : index
    %c7_57 = arith.constant 7 : index
    %c0_58 = arith.constant 0 : index
    %101 = vector.load %arg3[%c3_56, %c7_57, %c0_58] : memref<4x8x16xf32, #tpu.memory_space<vmem>>, vector<1x1x16xf32>
    %102 = vector.shape_cast %101 : vector<1x1x16xf32> to vector<1x16xf32>
    %103 = vector.extract_strided_slice %99 {offsets = [0, 0], sizes = [1, 16], strides = [1, 1]} : vector<16x16xf32> to vector<1x16xf32>
    %104 = arith.select %100, %102, %103 : vector<1x16xf32>
    %c0_i32_59 = arith.constant 0 : i32
    %105 = arith.cmpi slt, %arg1, %c0_i32_59 : i32
    %c3_60 = arith.constant 3 : index
    %c0_61 = arith.constant 0 : index
    %c0_62 = arith.constant 0 : index
    %106 = vector.load %arg4[%c3_60, %c0_61, %c0_62] : memref<4x8x16xf32, #tpu.memory_space<vmem>>, vector<1x1x16xf32>
    %107 = vector.shape_cast %106 : vector<1x1x16xf32> to vector<1x16xf32>
    %108 = vector.extract_strided_slice %99 {offsets = [15, 0], sizes = [1, 16], strides = [1, 1]} : vector<16x16xf32> to vector<1x16xf32>
    %109 = arith.select %105, %107, %108 : vector<1x16xf32>
    %cst_63 = arith.constant dense<0.000000e+00> : vector<32x16xf32>
    %110 = tpu.matmul %0, %99, %cst_63 {dimension_numbers = #tpu.dot_dimension_numbers<[1], [0], [0], [1], [0, 0, 1, 1], [], []>} : vector<32x16xf32>, vector<16x16xf32>, vector<32x16xf32> -> vector<32x16xf32>
    %cst_64 = arith.constant 2.500000e-01 : f32
    %111 = vector.broadcast %cst_64 : f32 to vector<1x16xf32>
    %112 = arith.mulf %111, %104 : vector<1x16xf32>
    %113 = vector.broadcast %6 : vector<32x1xf32> to vector<32x16xf32>
    %114 = vector.broadcast %112 : vector<1x16xf32> to vector<32x16xf32>
    %115 = arith.mulf %113, %114 : vector<32x16xf32>
    %116 = arith.addf %110, %115 : vector<32x16xf32>
    %cst_65 = arith.constant 2.500000e-01 : f32
    %117 = vector.broadcast %cst_65 : f32 to vector<1x16xf32>
    %118 = arith.mulf %117, %109 : vector<1x16xf32>
    %119 = vector.broadcast %10 : vector<32x1xf32> to vector<32x16xf32>
    %120 = vector.broadcast %118 : vector<1x16xf32> to vector<32x16xf32>
    %121 = arith.mulf %119, %120 : vector<32x16xf32>
    %122 = arith.addf %116, %121 : vector<32x16xf32>
    %cst_66 = arith.constant dense<0.000000e+00> : vector<32x32xf32>
    %123 = tpu.matmul %122, %1, %cst_66 {dimension_numbers = #tpu.dot_dimension_numbers<[1], [0], [0], [1], [0, 0, 1, 1], [], []>} : vector<32x16xf32>, vector<16x32xf32>, vector<32x32xf32> -> vector<32x32xf32>
    %c3_67 = arith.constant 3 : index
    %c0_68 = arith.constant 0 : index
    %c0_69 = arith.constant 0 : index
    %124 = vector.load %arg7[%c3_67, %c0_68, %c0_69] : memref<4x32x32xf32, #tpu.memory_space<vmem>>, vector<1x32x32xf32>
    %125 = vector.shape_cast %124 : vector<1x32x32xf32> to vector<32x32xf32>
    %126 = vector.shape_cast %123 : vector<32x32xf32> to vector<1x32x32xf32>
    tpu.vector_store %arg7[%c3_67, %c0_68, %c0_69], %126 {strides = array<i32>} : memref<4x32x32xf32, #tpu.memory_space<vmem>>, vector<1x32x32xf32>,
    return
  }
  func.func @transform_0(%arg0: i32, %arg1: i32) -> (i32, i32, i32) {
    %c0_i32 = arith.constant 0 : i32
    %c0_i32_0 = arith.constant 0 : i32
    return %arg0, %arg1, %c0_i32 : i32, i32, i32
  }
  func.func @transform_1(%arg0: i32, %arg1: i32) -> (i32, i32, i32) {
    %c2_i32 = arith.constant 2 : i32
    %0 = arith.muli %arg1, %c2_i32 : i32
    %c1_i32 = arith.constant 1 : i32
    %1 = arith.subi %0, %c1_i32 : i32
    %c0_i32 = arith.constant 0 : i32
    %2 = arith.maxsi %1, %c0_i32 : i32
    %c0_i32_0 = arith.constant 0 : i32
    %c0_i32_1 = arith.constant 0 : i32
    return %arg0, %2, %c0_i32_0 : i32, i32, i32
  }
  func.func @transform_2(%arg0: i32, %arg1: i32) -> (i32, i32, i32) {
    %c1_i32 = arith.constant 1 : i32
    %0 = arith.addi %arg1, %c1_i32 : i32
    %c2_i32 = arith.constant 2 : i32
    %1 = arith.muli %0, %c2_i32 : i32
    %c1_i32_0 = arith.constant 1 : i32
    %2 = arith.minsi %1, %c1_i32_0 : i32
    %c0_i32 = arith.constant 0 : i32
    %c0_i32_1 = arith.constant 0 : i32
    return %arg0, %2, %c0_i32 : i32, i32, i32
  }
  func.func @transform_3(%arg0: i32, %arg1: i32) -> (i32, i32) {
    %c0_i32 = arith.constant 0 : i32
    %c0_i32_0 = arith.constant 0 : i32
    %c0_i32_1 = arith.constant 0 : i32
    return %c0_i32, %c0_i32_0 : i32, i32
  }
  func.func @transform_4(%arg0: i32, %arg1: i32) -> (i32, i32) {
    %c0_i32 = arith.constant 0 : i32
    %c0_i32_0 = arith.constant 0 : i32
    %c0_i32_1 = arith.constant 0 : i32
    return %c0_i32, %c0_i32_0 : i32, i32
  }
  func.func @transform_5(%arg0: i32, %arg1: i32) -> (i32, i32, i32) {
    %c0_i32 = arith.constant 0 : i32
    %c0_i32_0 = arith.constant 0 : i32
    return %arg0, %arg1, %c0_i32 : i32, i32, i32
  }
}

</mosaic_0001>

<bundles_post_ra>
// kernel: tpu_custom_call.1
= control target key start
LH: loop header
LB: loop body
LE: loop exit
PB: predicated region body
PF: predicated region fallthrough
CT: control target
= control target key end

     0   :  { %s2431_s0 = inlined_call_operand.hbm [shape: f32[8,16,16], index: 0, kind: input, shape index: {}]   ;;  %s2432_s1 = inlined_call_operand.hbm [shape: f32[8,16,16], index: 1, kind: input, shape index: {}]   ;;  %s2433_s2 = inlined_call_operand.hbm [shape: f32[8,16,16], index: 2, kind: input, shape index: {}]   ;;  %s2434_s3 = inlined_call_operand.vmem [shape: f32[32,16], index: 3, kind: input, shape index: {}]   ;;  %s2435_s4 = inlined_call_operand.vmem [shape: f32[16,32], index: 4, kind: input, shape index: {}]   ;;  %s2436_s5 = inlined_call_operand.hbm [shape: f32[8,32,32], index: 5, kind: output, shape index: {}]  }
   0x1   :  { %2451 = sst [smem:[#allocation18_spill]] %s2432_s1 }
   0x2   :  { %10 = vsyncpa [#allocation3], 0 }
   0x3   :  { %12 = vsyncpa [#allocation3 + $0x1], 0 }
   0x4   :  { %13 = vsyncpa [#allocation6], 0 }
   0x5   :  { %15 = vsyncpa [#allocation6 + $0x1], 0 }
   0x6   :  { %16 = vsyncpa [#allocation4], 0 }
   0x7   :  { %18 = vsyncpa [#allocation4 + $0x1], 0  ;;  %s2024_s18 = smov 0   ;;  %s2026_s19 = smov 0  }
   0x8   :  { %s2028_s20 = smov 0   ;;  %s2030_s21 = smov 0  }
   0x9   :  { %s2032_s22 = smov 0   ;;  %s2034_s23 = smov 0  }
   0xa LB: > { %2452 = sst [smem:[#allocation12_spill]] %s1970_s20  ;;  %s2055_s24 = sadd.s32 4294967295, %s1982_s23   ;;  %s1982_s23 = sphi %s2034_s23, %s24_s23   ;;  %s1978_s22 = sphi %s2032_s22, %s2480_s22   ;;  %s1974_s21 = sphi %s2030_s21, %s2479_s21   ;;  %s1970_s20 = sphi %s2028_s20, %s2478_s20   ;;  %s1966_s19 = sphi %s2026_s19, %s2482_s19   ;;  %s1962_s18 = sphi %s2024_s18, %s2481_s18  }
   0xb   : > { %2453 = sst [smem:[#allocation13_spill]] %s1978_s22  ;;  %s1474_s25 = sadd.s32 4294967294, %s1982_s23  }
   0xc   : > { %2454 = sst [smem:[#allocation14_spill]] %s1982_s23  ;;  %s36_s26 = sadd.s32 1, %s1978_s22 }
   0xd   : > { %s45_s27 = sadd.s32 1, %s1970_s20  ;;  %p38_p0 = scmp.ge.s32.totalorder %s36_s26, 2 }
   0xe   : > { %p52_p1 = scmp.ne.s32.totalorder %s1970_s20, %s1966_s19  ;;  %p53_p2 = scmp.eq.s32.totalorder %s1982_s23, 0 }
   0xf   : > { %p58_p3 = scmp.ne.s32.totalorder %s1966_s19, %s1962_s18  ;;  %s2484_s26 = smov (%p38_p0, %s36_s26), 0 }
  0x10   : > { %2455 = sst [smem:[#allocation15_spill]] %s2484_s26  ;;  %p2067_p4 = por %p53_p2, %p52_p1 }
  0x11   : > { %p59_p5 = scmp.eq.s32.totalorder %s2055_s24, 0  ;;  %s40_s29 = ssub.s32 %s1978_s22, %s2484_s26 }
  0x12   : > { %p198_p6 = scmp.eq.s32.totalorder %s2055_s24, 1  ;;  %p43_p7 = scmp.eq.s32.totalorder %s40_s29, 0 }
  0x13   : > { %p2075_p8 = por %p59_p5, %p58_p3  ;;  %p204_p10 = scmp.eq.s32.totalorder %s1474_s25, 1 }
  0x14   : > { %p2079_p9 = por %p198_p6, %p52_p1  ;;  %p1750_p13 = scmp.lt.s32.totalorder %s1982_s23, 2 }
  0x15   : > { %s2457_s30 = scalar_select %p2075_p8, 1, 0 }
  0x16   : > { %s2458_s6 = scalar_select %p2079_p9, 1, 0 }
  0x17   : > { %s2084_s7 = scalar_select %p43_p7, %s1970_s20, %s45_s27  }
  0x18   : > { %p2086_p11 = por %p204_p10, %p58_p3  ;;  %s2093_s9 = sand.u32 1, %s1970_s20  }
  0x19   : > { %2459 = sst [smem:[#allocation16_spill]] %s2084_s7  ;;  %s2096_s10 = sshll.u32 %s1978_s22, 10 }
  0x1a   : > { %s2460_s8 = scalar_select %p2086_p11, 1, 0 }
  0x1b   : > { %p2100_p0 = pnand %p1750_p13, %p2067_p4  ;;  %s254_s12 = sand.u32 1, %s1982_s23  }
  0x1c   : > { %2461 = sst [smem:[#allocation17_spill]] %s2460_s8  ;;  %s2437_s13 = sshll.u32 %s2093_s9, 5 }
  0x1d   : > { %s2463_s1 = sld [smem:[#allocation18_spill]]  ;;  %s258_s17 = scalar_lea.vmem [#allocation5], %s2437_s13 }
  0x1e   : > { %s271_s25 = sshll.u32 %s258_s17, 4  ;;  %s2116_s27 = scalar_lea.sflag [#allocation6], %s254_s12  ;;  %s2114_s25 = int_to_ptr.vmem [resolvable:$true] %s271_s25 }
  0x1f   : > { %p2122_p2 = pneg %p2100_p0 }
  0x23   : > { %s2110_s16 = scalar_lea.hbm %s2463_s1, %s2096_s10  ;;  %s1811_s13 = scalar_lea.hbm %s2463_s1, 2048 }
  0x24   : > { %s1806_s28 = scalar_lea.hbm %s2110_s16, 512  ;;  %p1812_p5 = scmp.lt.u32.totalorder %s2110_s16, %s2463_s1 }
  0x25   : > { %p1807_p1 = scmp.ne.s32.totalorder %s2110_s16, %s1806_s28  ;;  %p1813_p6 = scmp.lt.u32.totalorder %s1811_s13, %s1806_s28 }
  0x26   : > { %p1815_p10 = scmp.lt.u32.totalorder %s1806_s28, %s2110_s16 }
  0x27   : > { %p1809_p3 = pnand %p2122_p2, %p1807_p1  ;;  %p1814_p7 = por %p1813_p6, %p1812_p5 }
  0x29   : > { %p1810_p4 = pneg %p1809_p3  ;;  %p1816_p13 = por %p1815_p10, %p1814_p7 }
  0x2b   : > { %p1817_p12 = pnand %p1816_p13, %p1810_p4 }
  0x2d   : > { %1820 = shalt.err (!%p1817_p12)
}
  0x2e   : > { %s1821_s12 = scalar_lea.vmem %s2114_s25, 512  ;;  %s1984_s14 = smov [#allocation5]  }
  0x2f   : > { %p1822_p1 = scmp.ne.s32.totalorder %s2114_s25, %s1821_s12  ;;  %s1826_s15 = sshll.u32 %s1984_s14, 4  ;;  %s1827_s15 = int_to_ptr.vmem [resolvable:$false] %s1826_s15 }
  0x30   : > { %s1828_s26 = scalar_lea.vmem %s1827_s15, 1024  ;;  %p1829_p9 = scmp.lt.s32.totalorder %s2114_s25, %s1827_s15 }
  0x31   : > { %p1824_p3 = pnand %p1822_p1, %p2122_p2  ;;  %p1830_p8 = scmp.lt.s32.totalorder %s1828_s26, %s1821_s12 }
  0x33   : > { %p1825_p11 = pneg %p1824_p3  ;;  %p1831_p5 = por %p1830_p8, %p1829_p9 }
  0x35   : > { %p1832_p6 = pnand %p1831_p5, %p1825_p11 }
  0x37   : > { %1835 = shalt.err (!%p1832_p6)
}
  0x38   : > { %s2443_s13 = smov 256   ;;  %s2444_s28 = smov 128  }
  0x39   : > { %s2446_s17 = smov 8   ;;  %s2465_s12 = sshll.u32 %s2093_s9, 5 }
  0x3a   : > { %1742 = dma.hbm_to_vmem [thread:$0]  (!%p2100_p0), %s2110_s16, 512, %s2114_s25, %s2116_s27, %s2443_s13, %s2444_s28, %s2446_s17  }
  0x3b   : > { %s285_s14 = scalar_lea.vmem [#allocation7], %s2465_s12  ;;  %p1489_p8 = scmp.ge.s32.totalorder %s1982_s23, 1 }
  0x3c   : > { %s298_s15 = sshll.u32 %s285_s14, 4  ;;  %p306_p9 = scmp.lt.s32.totalorder %s1982_s23, 3  ;;  %s2152_s15 = int_to_ptr.vmem [resolvable:$true] %s298_s15 }
  0x3d   : > { %s1477_s1 = sshll.u32 %s2093_s9, 6  ;;  %s2164_s20 = scalar_lea.hbm %s2431_s0, %s2096_s10 }
  0x3e   : > { %p2155_p11 = pnand %p1489_p8, %p306_p9  ;;  %s1564_s16 = sadd.s32 128, %s2096_s10 }
  0x3f   : > { %s234_s25 = scalar_lea.vmem [#allocation2], %s1477_s1  ;;  %s2170_s28 = scalar_lea.hbm %s2433_s2, %s1564_s16 }
  0x40   : > { %s2466_s26 = scalar_select %p2155_p11, 1, 0 }
  0x41   : > { %s244_s12 = sshll.u32 %s234_s25, 4  ;;  %s231_s17 = scalar_lea.sflag [#allocation3], %s2093_s9  ;;  %s2172_s12 = int_to_ptr.vmem [resolvable:$true] %s244_s12 }
  0x42   : > { %s1836_s23 = scalar_lea.hbm %s2164_s20, 1024  ;;  %s1841_s8 = scalar_lea.hbm %s2431_s0, 2048 }
  0x43   : > { %p1837_p12 = scmp.ne.s32.totalorder %s2164_s20, %s1836_s23  ;;  %p1842_p10 = scmp.lt.u32.totalorder %s2164_s20, %s2431_s0 }
  0x44   : > { %p1843_p13 = scmp.lt.u32.totalorder %s1841_s8, %s1836_s23  ;;  %p1845_p3 = scmp.lt.u32.totalorder %s1836_s23, %s2164_s20 }
  0x45   : > { %p1839_p4 = pnand %p1837_p12, %p2122_p2 }
  0x46   : > { %p1844_p1 = por %p1843_p13, %p1842_p10 }
  0x47   : > { %p1840_p7 = pneg %p1839_p4 }
  0x48   : > { %p1846_p5 = por %p1845_p3, %p1844_p1 }
  0x4a   : > { %p1847_p6 = pnand %p1846_p5, %p1840_p7 }
  0x4c   : > { %1850 = shalt.err (!%p1847_p6)
}
  0x4d   : > { %s1851_s13 = scalar_lea.vmem %s2172_s12, 1024  ;;  %s1988_s16 = smov [#allocation2]  }
  0x4e   : > { %p1852_p8 = scmp.ne.s32.totalorder %s2172_s12, %s1851_s13  ;;  %s1856_s25 = sshll.u32 %s1988_s16, 4  ;;  %s1857_s25 = int_to_ptr.vmem [resolvable:$false] %s1856_s25 }
  0x4f   : > { %s1858_s14 = scalar_lea.vmem %s1857_s25, 2048  ;;  %p1859_p4 = scmp.lt.s32.totalorder %s2172_s12, %s1857_s25 }
  0x50   : > { %p1854_p9 = pnand %p1852_p8, %p2122_p2  ;;  %p1860_p11 = scmp.lt.s32.totalorder %s1858_s14, %s1851_s13 }
  0x52   : > { %p1855_p12 = pneg %p1854_p9  ;;  %p1861_p10 = por %p1860_p11, %p1859_p4 }
  0x54   : > { %p1862_p13 = pnand %p1861_p10, %p1855_p12 }
  0x56   : > { %1865 = shalt.err (!%p1862_p13)
}
  0x57   : > { %s2467_s23 = smov 8   ;;  %s2468_s8 = smov 128  }
  0x58   : > { %1739 = dma.hbm_to_vmem [thread:$0]  (!%p2100_p0), %s2164_s20, 1024, %s2172_s12, %s231_s17, %s2468_s8, %s2468_s8, %s2467_s23  }
  0x59   : > { %s1866_s22 = scalar_lea.hbm %s2170_s28, 512  ;;  %s1871_s1 = scalar_lea.hbm %s2433_s2, 2048 }
  0x5a   : > { %p1867_p7 = scmp.ne.s32.totalorder %s2170_s28, %s1866_s22  ;;  %p1872_p3 = scmp.lt.u32.totalorder %s2170_s28, %s2433_s2 }
  0x5b   : > { %p1873_p5 = scmp.lt.u32.totalorder %s1871_s1, %s1866_s22  ;;  %p1875_p8 = scmp.lt.u32.totalorder %s1866_s22, %s2170_s28 }
  0x5c   : > { %p1869_p11 = pnand %p1867_p7, %p2122_p2 }
  0x5d   : > { %p1874_p6 = por %p1873_p5, %p1872_p3 }
  0x5e   : > { %p1870_p1 = pneg %p1869_p11 }
  0x5f   : > { %p1876_p9 = por %p1875_p8, %p1874_p6 }
  0x61   : > { %p1877_p12 = pnand %p1876_p9, %p1870_p1 }
  0x63   : > { %1880 = shalt.err (!%p1877_p12)
}
  0x64   : > { %s1881_s20 = scalar_lea.vmem %s2152_s15, 512  ;;  %s1989_s9 = smov [#allocation7]  }
  0x65   : > { %p1882_p4 = scmp.ne.s32.totalorder %s2152_s15, %s1881_s20  ;;  %s1886_s17 = sshll.u32 %s1989_s9, 4  ;;  %s1887_s17 = int_to_ptr.vmem [resolvable:$false] %s1886_s17 }
  0x66   : > { %s1888_s12 = scalar_lea.vmem %s1887_s17, 1024  ;;  %p1889_p7 = scmp.lt.s32.totalorder %s2152_s15, %s1887_s17 }
  0x67   : > { %p1884_p10 = pnand %p1882_p4, %p2122_p2  ;;  %p1890_p11 = scmp.lt.s32.totalorder %s1888_s12, %s1881_s20 }
  0x69   : > { %p1885_p13 = pneg %p1884_p10  ;;  %p1891_p3 = por %p1890_p11, %p1889_p7 }
  0x6b   : > { %p1892_p5 = pnand %p1891_p3, %p1885_p13 }
  0x6d   : > { %1895 = shalt.err (!%p1892_p5)
}
  0x6e   : > { %s2469_s25 = smov 256   ;;  %p2470_p2 = scmp.ne.s32.totalorder %s2466_s26, 0 }
  0x6f   : > { %1745 = dma.hbm_to_vmem [thread:$0]  (!%p2100_p0), %s2170_s28, 512, %s2152_s15, %s2116_s27, %s2469_s25, %s2468_s8, %s2467_s23  }
  0x70   : > { %310 = sbr.rel (%p2470_p2) target bundleno = 604 (0x25c), region = 40  ;;  %s2229_s29 = sand.u32 (!%p2470_p2), 1, %s1966_s19  }
  0x71   : > { %s1490_s14 = sshll.u32 (!%p2470_p2), %s2229_s29, 6  ;;  %s313_s22 = scalar_lea.sflag (!%p2470_p2), [#allocation3], %s2229_s29 }
  0x72   : > { %s316_s7 = scalar_lea.vmem (!%p2470_p2), [#allocation2], %s1490_s14  ;;  %p2471_p1 = scmp.ne.s32.totalorder (!%p2470_p2), %s2457_s30, 0 }
  0x77   : > { %1949 = dma.done.wait (%p2471_p1), %s313_s22, 1024  }
  0x78   : > { %1951 = vsyncadd (%p2471_p1), %s313_s22, 4294966272  ;;  %s321_s11 = sand.u32 1, %s2055_s24  }
  0x79   : > { %s322_s27 = scalar_lea.sflag [#allocation6], %s321_s11 }
  0x7a   : > { %1953 = dma.done.wait (%p2471_p1), %s322_s27, 1024  }
  0x7b   : > { %1955 = vsyncadd (%p2471_p1), %s322_s27, 4294966272  ;;  %vm446_vm0 = vcmask 130048   ;;  %v420_v0 = vld [vmem:[%s316_s7] sm:$0xff]  ;;  %v421_v1 = vld [vmem:[%s316_s7 + $0x8] sm:$0xff]  ;;  %v391_v19 = vlaneseq  ;;  %v1990_v29 = vmov 0.0   ;;  %s1493_s9 = sshll.u32 %s2229_s29, 7 }
  0x7c   : > { %v385_v2 = vld [vmem:[%s2434_s3] sm:$0xff]  ;;  %v1696_v3 = vpack.c.bf16 %v421_v1, %v420_v0  ;;  %v1504_v4 = vld [vmem:[%s316_s7 + $0x10] sm:$0xff]  ;;  %v1505_v5 = vld [vmem:[%s316_s7 + $0x18] sm:$0xff]  ;;  %v434_v21 = vrot.slane %v421_v1, 7  ;;  %v437_v22 = vmul.f32 0.25, %v420_v0  ;;  %vm654_vm3 = vcmask 261120  }
  0x7d   : > { %1620 = vmatprep.mubr.msk.f32.mxu0 %vm446_vm0, %v385_v2  ;;  %v1704_v6 = vpack.c.bf16 %v1505_v5, %v1504_v4  ;;  %v2246_v7 = vld [vmem:[%s316_s7 + $0x20] sm:$0xff]  ;;  %v2248_v8 = vld [vmem:[%s316_s7 + $0x28] sm:$0xff]  ;;  %v387_v10 = vld [vmem:[%s2434_s3 + $0x10] sm:$0xff]  ;;  %v392_v20 = vshrl.u32 %v391_v19, 7  ;;  %v668_v28 = vrot.slane %v1505_v5, 7  ;;  %v671_v31 = vmul.f32 0.25, %v1504_v4 }
  0x7e   : > { %1697 = vmatprep.subr.bf16.mxu0 %v1696_v3  ;;  %v386_v9 = vld [vmem:[%s2434_s3 + $0x8] sm:$0xff]  ;;  %v1712_v11 = vpack.c.bf16 %v2248_v8, %v2246_v7  ;;  %v388_v12 = vld [vmem:[%s2434_s3 + $0x18] sm:$0xff]  ;;  %v2263_v13 = vld [vmem:[%s316_s7 + $0x30] sm:$0xff]  ;;  %v544_v24 = vmul.f32 0.25, %v434_v21  ;;  %v889_v43 = vrot.slane %v2248_v8, 7  ;;  %v892_v48 = vmul.f32 0.25, %v2246_v7 }
  0x7f   : > { %1699 = vmatpush3.bf16.msra.mxu0 %v1696_v3  ;;  %v2265_v14 = vld [vmem:[%s316_s7 + $0x38] sm:$0xff]  ;;  %v389_v16 = vld [vmem:[%s2435_s4] sm:$0xff]  ;;  %v390_v17 = vld [vmem:[%s2435_s4 + $0x8] sm:$0xff]  ;;  %v2293_v23 = vsub.s32 0, %v392_v20  ;;  %vm396_vm1 = vcmp.eq.s32.totalorder %v392_v20, 0  ;;  %v395_v26 = vadd.s32 24, %v392_v20 }
  0x80   : > { %1705 = vmatprep.subr.bf16.mxu0 %v1704_v6  ;;  %v1720_v15 = vpack.c.bf16 %v2265_v14, %v2263_v13  ;;  %v2288_v18 = vpack.c.bf16 %v390_v17, %v389_v16  ;;  %v2297_v30 = vsel %vm396_vm1, 1.0, %v1990_v29  ;;  %v765_v34 = vmul.f32 0.25, %v668_v28  ;;  %s2341_s17 = scalar_lea.vmem [#allocation8], %s1493_s9  ;;  %s1566_s12 = sshll.u32 %s1974_s21, 11 }
  0x81   : > { %v441_v25 = vrot.slane %v437_v22, %v2293_v23  ;;  %v548_v27 = vrot.slane %v544_v24, %v2293_v23  ;;  %vm411_vm2 = vcmp.eq.s32.totalorder %v395_v26, 31  ;;  %v675_v40 = vrot.slane %v671_v31, %v2293_v23  ;;  %s1339_s25 = sshll.u32 %s2341_s17, 4  ;;  %s2376_s7 = scalar_lea.hbm %s2436_s5, %s1566_s12  ;;  %s2378_s25 = int_to_ptr.vmem [resolvable:$true] %s1339_s25 }
  0x82   : > { %1621 = vmatmul.mubr.msk.f32.vlgmr.msra.gmra.mrb[0].mxu0 %vm446_vm0, %v386_v9  ;;  %1701 = vmatprep.subr.bf16.mxu1 %v2288_v18  ;;  %v2300_v37 = vsel %vm411_vm2, 1.0, %v1990_v29  ;;  %v769_v42 = vrot.slane %v765_v34, %v2293_v23  ;;  %v986_v54 = vmul.f32 0.25, %v889_v43  ;;  %v896_v61 = vrot.slane %v892_v48, %v2293_v23  ;;  %s1323_s21 = scalar_lea.sflag [#allocation4], %s2229_s29  ;;  %s1896_s11 = scalar_lea.vmem %s2378_s25, 2048 }
  0x83   : > { %1707 = vmatpush3.bf16.msra.mxu0 %v1704_v6  ;;  %1623 = vmatprep.mubr.msk.f32.mxu0 %vm446_vm0, %v387_v10  ;;  %v443_v32 = vmul.f32 0.0, %v441_v25  ;;  %v442_v33 = vmul.f32 %v2297_v30, %v441_v25  ;;  %v549_v35 = vmul.f32 0.0, %v548_v27  ;;  %v552_v45 = vmul.f32 %v2300_v37, %v548_v27  ;;  %p1897_p0 = scmp.ne.s32.totalorder %s2378_s25, %s1896_s11  ;;  %p2472_p6 = scmp.ne.s32.totalorder %s2458_s6, 0 }
  0x84   : > { %1713 = vmatprep.subr.bf16.mxu0 %v1712_v11  ;;  %1703 = vmatpush3.bf16.msra.mxu1 %v2288_v18  ;;  %v677_v51 = vmul.f32 0.0, %v675_v40  ;;  %v676_v53 = vmul.f32 %v2297_v30, %v675_v40  ;;  %v770_v56 = vmul.f32 0.0, %v769_v42  ;;  %v990_v63 = vrot.slane %v986_v54, %v2293_v23  ;;  %s1991_s27 = smov [#allocation8]  }
  0x85   : > { %1709 = vmatprep.subr.bf16.mxu1 %v2288_v18  ;;  %v1110_v0 = vrot.slane %v2265_v14, 7  ;;  %v1113_v5 = vmul.f32 0.25, %v2263_v13  ;;  %v898_v8 = vmul.f32 0.0, %v896_v61  ;;  %p1898_p8 = pnand %p1897_p0, %p2472_p6  ;;  %s1900_s28 = sshll.u32 %s1991_s27, 4  ;;  %s1901_s28 = int_to_ptr.vmem [resolvable:$false] %s1900_s28 }
  0x86   : > { %1624 = vmatmul.mubr.msk.f32.gmra.mrb[2].mxu0 %vm446_vm0, %v388_v12  ;;  %v991_v14 = vmul.f32 0.0, %v990_v63  ;;  %v994_v24 = vmul.f32 %v2300_v37, %v990_v63  ;;  %s1902_s15 = scalar_lea.vmem %s1901_s28, 4096  ;;  %p1903_p12 = scmp.lt.s32.totalorder %s2378_s25, %s1901_s28 }
  0x87   : > { %1640 = vmatprep.mubr.msk.f32.mxu0 %vm446_vm0, %v385_v2  ;;  %v1117_v13 = vrot.slane %v1113_v5, %v2293_v23  ;;  %p1899_p9 = pneg %p1898_p8  ;;  %p1904_p4 = scmp.lt.s32.totalorder %s1902_s15, %s1896_s11 }
  0x89   : > { %v1119_v29 = vmul.f32 0.0, %v1117_v13  ;;  %p1905_p10 = por %p1904_p4, %p1903_p12 }
  0x8a   : > { %1641 = vmatmul.mubr.msk.f32.vlgmr.msra.gmra.mrb[4].mxu0 %vm446_vm0, %v386_v9 }
  0x8b   : > { %1715 = vmatpush3.bf16.msra.mxu0 %v1712_v11  ;;  %1643 = vmatprep.mubr.msk.f32.mxu0 %vm446_vm0, %v387_v10  ;;  %v1207_v11 = vmul.f32 0.25, %v1110_v0  ;;  %p1906_p13 = pnand %p1905_p10, %p1899_p9 }
  0x8c   : > { %1721 = vmatprep.subr.bf16.mxu0 %v1720_v15 }
  0x8d   : > { %v1211_v21 = vrot.slane %v1207_v11, %v2293_v23 }
  0x8e   : > { %1644 = vmatmul.mubr.msk.f32.gmra.mrb[6].mxu0 %vm446_vm0, %v388_v12 }
  0x8f   : > { %1660 = vmatprep.mubr.msk.f32.mxu0 %vm446_vm0, %v385_v2  ;;  %v1212_v34 = vmul.f32 0.0, %v1211_v21 }
  0x92   : > { %1661 = vmatmul.mubr.msk.f32.vlgmr.msra.gmra.mrb[8].mxu0 %vm446_vm0, %v386_v9 }
  0x93   : > { %1723 = vmatpush3.bf16.msra.mxu0 %v1720_v15  ;;  %1663 = vmatprep.mubr.msk.f32.mxu0 %vm446_vm0, %v387_v10 }
  0x96   : > { %1664 = vmatmul.mubr.msk.f32.gmra.mrb[10].mxu0 %vm446_vm0, %v388_v12 }
  0x97   : > { %1680 = vmatprep.mubr.msk.f32.mxu0 %vm446_vm0, %v385_v2  ;;  %v773_v2 = vmul.f32 %v2300_v37, %v769_v42 }
  0x9a   : > { %1681 = vmatmul.mubr.msk.f32.vlgmr.msra.gmra.mrb[12].mxu0 %vm446_vm0, %v386_v9 }
  0x9b   : > { %1683 = vmatprep.mubr.msk.f32.mxu0 %vm446_vm0, %v387_v10  ;;  %v897_v10 = vmul.f32 %v2297_v30, %v896_v61 }
  0x9e   : > { %1684 = vmatmul.mubr.msk.f32.gmra.mrb[14].mxu0 %vm446_vm0, %v388_v12 }
 0x155   : > { %v1622_v36 = vpop.f32.mrb[0].mxu0 }
 0x156   : > { %v531_v38 = vadd.f32 %v1622_v36, %v443_v32  ;;  %v525_v39 = vpop.f32.mrb[1].mxu0 }
 0x157   : > { %v526_v41 = vadd.f32 %v525_v39, %v442_v33 }
 0x158   : > { %v554_v44 = vadd.f32 %v549_v35, %v531_v38 }
 0x159   : > { %v1625_v46 = vpop.f32.mrb[2].mxu0  ;;  %v553_v47 = vadd.f32 %v549_v35, %v526_v41  ;;  %v1215_v41 = vmul.f32 %v2300_v37, %v1211_v21 }
 0x15a   : > { %v541_v49 = vadd.f32 %v1625_v46, %v443_v32  ;;  %v535_v50 = vpop.f32.mrb[3].mxu0 }
 0x15b   : > { %v536_v52 = vadd.f32 %v535_v50, %v443_v32  ;;  %1630 = vmatprep.mubr.msk.f32.mxu1 %vm446_vm0, %v553_v47  ;;  %v1118_v32 = vmul.f32 %v2297_v30, %v1117_v13 }
 0x15c   : > { %v556_v55 = vadd.f32 %v552_v45, %v541_v49  ;;  %1631 = vmatmul.mubr.msk.f32.vlgmr.msra.gmra.mrb[0].mxu1 %vm446_vm0, %v554_v44 }
 0x15d   : > { %v555_v57 = vadd.f32 %v549_v35, %v536_v52  ;;  %v1642_v58 = vpop.f32.mrb[4].mxu0  ;;  %1711 = vmatpush3.bf16.msra.mxu1 %v2288_v18 }
 0x15e   : > { %v752_v59 = vadd.f32 %v1642_v58, %v677_v51  ;;  %v746_v60 = vpop.f32.mrb[5].mxu0  ;;  %1717 = vmatprep.subr.bf16.mxu1 %v2288_v18 }
 0x15f   : > { %v747_v62 = vadd.f32 %v746_v60, %v676_v53  ;;  %1633 = vmatprep.mubr.msk.f32.mxu1 %vm446_vm0, %v555_v57 }
 0x160   : > { %v775_v1 = vadd.f32 %v770_v56, %v752_v59  ;;  %1634 = vmatmul.mubr.msk.f32.gmra.mrb[2].mxu1 %vm446_vm0, %v556_v55 }
 0x161   : > { %v774_v3 = vadd.f32 %v770_v56, %v747_v62  ;;  %v1645_v4 = vpop.f32.mrb[6].mxu0 }
 0x162   : > { %v762_v6 = vadd.f32 %v1645_v4, %v677_v51  ;;  %v756_v7 = vpop.f32.mrb[7].mxu0 }
 0x163   : > { %v757_v9 = vadd.f32 %v756_v7, %v677_v51  ;;  %1650 = vmatprep.mubr.msk.f32.mxu1 %vm446_vm0, %v774_v3 }
 0x164   : > { %v777_v12 = vadd.f32 %v773_v2, %v762_v6  ;;  %1651 = vmatmul.mubr.msk.f32.vlgmr.msra.gmra.mrb[4].mxu1 %vm446_vm0, %v775_v1 }
 0x165   : > { %v776_v15 = vadd.f32 %v770_v56, %v757_v9  ;;  %v1662_v16 = vpop.f32.mrb[8].mxu0  ;;  %1719 = vmatpush3.bf16.msra.mxu1 %v2288_v18 }
 0x166   : > { %v973_v17 = vadd.f32 %v1662_v16, %v898_v8  ;;  %v967_v19 = vpop.f32.mrb[9].mxu0  ;;  %1725 = vmatprep.subr.bf16.mxu1 %v2288_v18 }
 0x167   : > { %v968_v20 = vadd.f32 %v967_v19, %v897_v10  ;;  %1653 = vmatprep.mubr.msk.f32.mxu1 %vm446_vm0, %v776_v15 }
 0x168   : > { %v996_v22 = vadd.f32 %v991_v14, %v973_v17  ;;  %1654 = vmatmul.mubr.msk.f32.gmra.mrb[6].mxu1 %vm446_vm0, %v777_v12 }
 0x169   : > { %v995_v25 = vadd.f32 %v991_v14, %v968_v20  ;;  %v1665_v26 = vpop.f32.mrb[10].mxu0 }
 0x16a   : > { %v983_v27 = vadd.f32 %v1665_v26, %v898_v8  ;;  %v977_v28 = vpop.f32.mrb[11].mxu0 }
 0x16b   : > { %v978_v31 = vadd.f32 %v977_v28, %v898_v8  ;;  %1670 = vmatprep.mubr.msk.f32.mxu1 %vm446_vm0, %v995_v25 }
 0x16c   : > { %v998_v33 = vadd.f32 %v994_v24, %v983_v27  ;;  %1671 = vmatmul.mubr.msk.f32.vlgmr.msra.gmra.mrb[8].mxu1 %vm446_vm0, %v996_v22 }
 0x16d   : > { %v997_v23 = vadd.f32 %v991_v14, %v978_v31  ;;  %v1682_v35 = vpop.f32.mrb[12].mxu0  ;;  %1727 = vmatpush3.bf16.msra.mxu1 %v2288_v18 }
 0x16e   : > { %v1194_v36 = vadd.f32 %v1682_v35, %v1119_v29  ;;  %v1188_v38 = vpop.f32.mrb[13].mxu0 }
 0x16f   : > { %v1189_v39 = vadd.f32 %v1188_v38, %v1118_v32  ;;  %1673 = vmatprep.mubr.msk.f32.mxu1 %vm446_vm0, %v997_v23 }
 0x170   : > { %v1217_v40 = vadd.f32 %v1212_v34, %v1194_v36  ;;  %1674 = vmatmul.mubr.msk.f32.gmra.mrb[10].mxu1 %vm446_vm0, %v998_v33 }
 0x171   : > { %v1216_v30 = vadd.f32 %v1212_v34, %v1189_v39  ;;  %v1685_v42 = vpop.f32.mrb[14].mxu0 }
 0x172   : > { %v1204_v43 = vadd.f32 %v1685_v42, %v1119_v29  ;;  %v1198_v44 = vpop.f32.mrb[15].mxu0 }
 0x173   : > { %v1199_v45 = vadd.f32 %v1198_v44, %v1119_v29  ;;  %1690 = vmatprep.mubr.msk.f32.mxu1 %vm446_vm0, %v1216_v30 }
 0x174   : > { %v1219_v46 = vadd.f32 %v1215_v41, %v1204_v43  ;;  %1691 = vmatmul.mubr.msk.f32.vlgmr.msra.gmra.mrb[12].mxu1 %vm446_vm0, %v1217_v40 }
 0x175   : > { %v1218_v18 = vadd.f32 %v1212_v34, %v1199_v45 }
 0x177   : > { %1693 = vmatprep.mubr.msk.f32.mxu1 %vm446_vm0, %v1218_v18 }
 0x178   : > { %1694 = vmatmul.mubr.msk.f32.gmra.mrb[14].mxu1 %vm446_vm0, %v1219_v46 }
 0x22f   : > { %v1632_v47 = vpop.f32.mrb[0].mxu1 }
 0x230   : > { %656 = vst.msk [vmem:[%s2341_s17 + $0x8] sm:$0xff] %vm654_vm3, %v1632_v47  ;;  %v635_v37 = vpop.f32.mrb[1].mxu1 }
 0x231   : > { %655 = vst.msk [vmem:[%s2341_s17] sm:$0xff] %vm654_vm3, %v635_v37 }
 0x233   : > { %v1635_v48 = vpop.f32.mrb[2].mxu1 }
 0x234   : > { %658 = vst.msk [vmem:[%s2341_s17 + $0x18] sm:$0xff] %vm654_vm3, %v1635_v48  ;;  %v645_v49 = vpop.f32.mrb[3].mxu1 }
 0x235   : > { %657 = vst.msk [vmem:[%s2341_s17 + $0x10] sm:$0xff] %vm654_vm3, %v645_v49 }
 0x237   : > { %v1652_v50 = vpop.f32.mrb[4].mxu1 }
 0x238   : > { %1517 = vst.msk [vmem:[%s2341_s17 + $0x28] sm:$0xff] %vm654_vm3, %v1652_v50  ;;  %v856_v51 = vpop.f32.mrb[5].mxu1 }
 0x239   : > { %1516 = vst.msk [vmem:[%s2341_s17 + $0x20] sm:$0xff] %vm654_vm3, %v856_v51 }
 0x23b   : > { %v1655_v52 = vpop.f32.mrb[6].mxu1 }
 0x23c   : > { %1519 = vst.msk [vmem:[%s2341_s17 + $0x38] sm:$0xff] %vm654_vm3, %v1655_v52  ;;  %v866_v53 = vpop.f32.mrb[7].mxu1 }
 0x23d   : > { %1518 = vst.msk [vmem:[%s2341_s17 + $0x30] sm:$0xff] %vm654_vm3, %v866_v53 }
 0x23f   : > { %v1672_v54 = vpop.f32.mrb[8].mxu1 }
 0x240   : > { %1533 = vst.msk [vmem:[%s2341_s17 + $0x48] sm:$0xff] %vm654_vm3, %v1672_v54  ;;  %v1077_v55 = vpop.f32.mrb[9].mxu1 }
 0x241   : > { %1532 = vst.msk [vmem:[%s2341_s17 + $0x40] sm:$0xff] %vm654_vm3, %v1077_v55 }
 0x243   : > { %v1675_v56 = vpop.f32.mrb[10].mxu1 }
 0x244   : > { %1535 = vst.msk [vmem:[%s2341_s17 + $0x58] sm:$0xff] %vm654_vm3, %v1675_v56  ;;  %v1087_v57 = vpop.f32.mrb[11].mxu1 }
 0x245   : > { %1534 = vst.msk [vmem:[%s2341_s17 + $0x50] sm:$0xff] %vm654_vm3, %v1087_v57 }
 0x247   : > { %v1692_v58 = vpop.f32.mrb[12].mxu1 }
 0x248   : > { %1549 = vst.msk [vmem:[%s2341_s17 + $0x68] sm:$0xff] %vm654_vm3, %v1692_v58  ;;  %v1298_v59 = vpop.f32.mrb[13].mxu1 }
 0x249   : > { %1548 = vst.msk [vmem:[%s2341_s17 + $0x60] sm:$0xff] %vm654_vm3, %v1298_v59 }
 0x24b   : > { %v1695_v60 = vpop.f32.mrb[14].mxu1 }
 0x24c   : > { %1551 = vst.msk [vmem:[%s2341_s17 + $0x78] sm:$0xff] %vm654_vm3, %v1695_v60  ;;  %v1308_v61 = vpop.f32.mrb[15].mxu1 }
 0x24d   : > { %1550 = vst.msk [vmem:[%s2341_s17 + $0x70] sm:$0xff] %vm654_vm3, %v1308_v61 }
 0x24e   : > { %1909 = shalt.err (!%p1906_p13)
}
 0x24f   : > { %s1910_s24 = scalar_lea.hbm %s2376_s7, 2048  ;;  %s1914_s23 = scalar_lea.hbm %s2436_s5, 4096 }
 0x250   : > { %p1911_p7 = scmp.ne.s32.totalorder %s2376_s7, %s1910_s24  ;;  %p1915_p5 = scmp.lt.u32.totalorder %s2376_s7, %s2436_s5 }
 0x251   : > { %p1916_p2 = scmp.lt.u32.totalorder %s1914_s23, %s1910_s24  ;;  %p1918_p0 = scmp.lt.u32.totalorder %s1910_s24, %s2376_s7 }
 0x252   : > { %p1912_p11 = pnand %p1911_p7, %p2472_p6 }
 0x253   : > { %p1917_p1 = por %p1916_p2, %p1915_p5 }
 0x254   : > { %p1913_p3 = pneg %p1912_p11 }
 0x255   : > { %p1919_p8 = por %p1918_p0, %p1917_p1 }
 0x257   : > { %p1920_p9 = pnand %p1919_p8, %p1913_p3 }
 0x259   : > { %1923 = shalt.err (!%p1920_p9)
}
 0x25a   : > { %s1992_s1 = smov 128   ;;  %s1993_s13 = smov 8  }
 0x25b   : > { %1734 = dma.vmem_to_hbm [thread:$0]  (%p2472_p6), %s2378_s25, 2048, %s2376_s7, %s1323_s21, %s1992_s1, %s1992_s1, %s1993_s13  }
 0x25c PF: > { %s2473_s16 = sld [smem:[#allocation17_spill]]  ;;  %s2474_s20 = sld [smem:[#allocation14_spill]] }
 0x25d   : > { %s1354_s9 = sand.u32 1, %s1962_s18  }
 0x25e   : > { %s1355_s17 = scalar_lea.sflag [#allocation4], %s1354_s9 }
 0x262   : > { %p2475_p12 = scmp.ne.s32.totalorder %s2473_s16, 0  ;;  %p2476_p4 = scmp.ge.s32.totalorder %s2474_s20, 2 }
 0x264   : > { %p1747_p10 = pnand %p2476_p4, %p2475_p12 }
 0x266   : > { %1957 = dma.done.wait (!%p1747_p10), %s1355_s17, 2048  }
 0x267   : > { %1959 = vsyncadd (!%p1747_p10), %s1355_s17, 4294965248  ;;  %s24_s23 = sadd.s32 1, %s2474_s20   ;;  %s2477_s12 = sld [smem:[#allocation12_spill]] }
 0x268   : > { %p21_p13 = scmp.ge.s32.totalorder %s24_s23, 4   ;;  %s2478_s20 = sld [smem:[#allocation16_spill]] }
 0x269   : > { %s2479_s21 = sld [smem:[#allocation13_spill]]  ;;  %s2480_s22 = sld [smem:[#allocation15_spill]] }
 0x26a   : > { %s2481_s18 = smov %s1966_s19  ;;  %23 = sbr.rel (!%p21_p13) target bundleno = 10 (0xa), region = 121 }
 0x26d   : > { %s2482_s19 = smov %s2477_s12 }
 0x271   :  { %1360 = vsyncpa [#allocation3], 1 }
 0x272   :  { %1362 = vsyncpa [#allocation3 + $0x1], 1 }
 0x273   :  { %1363 = vsyncpa [#allocation6], 1 }
 0x274   :  { %1365 = vsyncpa [#allocation6 + $0x1], 1 }
 0x275   :  { %1366 = vsyncpa [#allocation4], 1 }
 0x276   :  { %1368 = vsyncpa [#allocation4 + $0x1], 1 }

</bundles_post_ra>
